<compile_context>
chip_gen: v5e
topology: v5e:2x2
jax: 0.10.0
libtpu: 0.0.40
codegen_flags: <defaults>
</compile_context>

<pallas_src>
import jax
import jax.numpy as jnp
from jax.experimental import pallas as pl
from jax.experimental.pallas import tpu as pltpu


def _round_up(x, m):
    return (x + m - 1) // m * m


def _cdiv(a, b):
    return -(-a // b)


def out_head_kernel(x_ref, w_ref, o_ref):
    # x_ref: (tm, E) activation tile, w_ref: (E, tv) weight tile,
    # o_ref: (tm, tv) logits tile.  Single MXU matmul, f32 accumulation,
    # full-E contraction (no K tiling needed for E up to ~1-2k).
    o_ref[...] = jnp.dot(
        x_ref[...], w_ref[...], preferred_element_type=jnp.float32
    ).astype(o_ref.dtype)


def prepare_out_head_weight(out_head_w, *, tv=1024, compute_dtype=jnp.bfloat16):
    """One-time weight prep, hoisted out of the forward (it is a constant).

    out_head_w: (V, E) f32, PyTorch nn.Linear weight layout.
    Returns (E, Vp) compute_dtype with Vp = round_up(V, effective vocab tile).
    Must be called with the same `tv` / `compute_dtype` used by the forward.
    """
    V, E = out_head_w.shape
    tv_eff = min(tv, _round_up(V, 128))
    Vp = _round_up(V, tv_eff)
    w_t = out_head_w.T.astype(compute_dtype)  # (E, V)
    if Vp != V:
        w_t = jnp.pad(w_t, ((0, 0), (0, Vp - V)))
    return w_t


def dummy_gpt_forward(
    in_idx,
    tok_emb_table,
    pos_emb_table,
    w_prepared,
    *,
    tv=1024,
    tm=None,
    compute_dtype=jnp.bfloat16,
    out_dtype=jnp.float32,
    vmem_fraction=0.75,
):
    """Pallas forward pass for DummyGptModel.

    in_idx:        (B, S) int32 token ids
    tok_emb_table: (V, E) f32
    pos_emb_table: (C, E) f32, context_length C >= S
    w_prepared:    (E, Vp) compute_dtype, from prepare_out_head_weight()
    returns logits (B, S, V) out_dtype
    """
    B, S = in_idx.shape
    V, E = tok_emb_table.shape
    M = B * S

    tv_eff = min(tv, _round_up(V, 128))
    Vp = _round_up(V, tv_eff)
    assert w_prepared.shape == (E, Vp) and w_prepared.dtype == jnp.dtype(compute_dtype), (
        "w_prepared must come from prepare_out_head_weight() with matching "
        "tv / compute_dtype"
    )

    # ---- glue (plain JAX, once per call): gather + pos add, flatten, cast ----
    # Dropout (eval mode), DummyTransformerBlock and DummyLayerNorm are all
    # identities, so the only kernel-worthy work is the output-head matmul.
    # TODO(synk): training-mode dropout (inverted mask via pltpu.prng_*) omitted;
    # eval-mode dropout is the identity, matching module defaults.
    x = tok_emb_table[in_idx] + pos_emb_table[:S][None, :, :]  # (B, S, E)
    x = x.reshape(M, E).astype(compute_dtype)                  # (M, E)

    in_bytes = jnp.dtype(compute_dtype).itemsize
    out_bytes = jnp.dtype(out_dtype).itemsize
    m_align = 16 if in_bytes == 2 else 8  # bf16 packs 16 rows per sublane pair

    # ---- VMEM budget (per-generation) and tile sizing ----
    try:
        vmem_cap = int(pltpu.get_tpu_info().vmem_capacity_bytes)
    except Exception:
        vmem_cap = 64 * 1024 * 1024  # conservative fallback (v7x-sized)
    budget = int(vmem_fraction * vmem_cap)  # ~48 MiB v7x, ~96 MiB v5e/v6e

    # Double-buffered W tile is fixed; solve for the largest tm whose
    # double-buffered x + out tiles still fit the budget.
    w_tile_bytes = 2 * E * tv_eff * in_bytes
    per_row_bytes = 2 * (E * in_bytes + tv_eff * out_bytes)
    tm_fit = max(m_align, (budget - w_tile_bytes) // per_row_bytes)
    if tm_fit >= 256:
        tm_fit = (tm_fit // 256) * 256       # MXU-friendly multiples of 256
    else:
        tm_fit = max(m_align, (tm_fit // m_align) * m_align)

    M_aligned = _round_up(M, m_align)
    tm_eff = min(tm_fit, M_aligned)
    if tm is not None:                        # optional user cap
        tm_eff = max(m_align, min(tm_eff, _round_up(tm, m_align)))
    nm = _cdiv(M_aligned, tm_eff)
    tm_eff = _round_up(_cdiv(M_aligned, nm), m_align)  # rebalance: minimal row pad
    Mp = nm * tm_eff
    nv = Vp // tv_eff

    if Mp != M:
        x = jnp.pad(x, ((0, Mp - M), (0, 0)))  # cheap: only the small x slab

    # ---- grid ordering: never re-stream the big (E, V) weight needlessly ----
    # m-outer (vocab inner): x read once, W read nm times.
    # v-outer (rows inner):  W read once, x read nv times.
    x_stream = Mp * E * in_bytes
    w_stream = E * Vp * in_bytes
    m_outer = (x_stream + nm * w_stream) <= (nv * x_stream + w_stream)

    if m_outer:
        grid = (nm, nv)
        x_spec = pl.BlockSpec((tm_eff, E), lambda i, j: (i, 0))
        w_spec = pl.BlockSpec((E, tv_eff), lambda i, j: (0, j))
        o_spec = pl.BlockSpec((tm_eff, tv_eff), lambda i, j: (i, j))
    else:
        grid = (nv, nm)
        x_spec = pl.BlockSpec((tm_eff, E), lambda j, i: (i, 0))
        w_spec = pl.BlockSpec((E, tv_eff), lambda j, i: (0, j))
        o_spec = pl.BlockSpec((tm_eff, tv_eff), lambda j, i: (i, j))

    cost = pl.CostEstimate(
        flops=2 * Mp * E * Vp,
        transcendentals=0,
        bytes_accessed=Mp * E * in_bytes + E * Vp * in_bytes + M * V * out_bytes,
    )

    # Output is the UNPADDED (M, V) array; Pallas masks the writes of the
    # partial last row / vocab tiles, so no post-kernel slice copy is needed.
    logits = pl.pallas_call(
        out_head_kernel,
        out_shape=jax.ShapeDtypeStruct((M, V), out_dtype),
        grid_spec=pltpu.PrefetchScalarGridSpec(
            num_scalar_prefetch=0,
            grid=grid,
            in_specs=[x_spec, w_spec],
            out_specs=o_spec,
        ),
        compiler_params=pltpu.CompilerParams(
            dimension_semantics=("parallel", "parallel"),
            vmem_limit_bytes=budget,
        ),
        cost_estimate=cost,
    )(x, w_prepared)

    return logits.reshape(B, S, V)


def dummy_gpt_reference(in_idx, tok_emb_table, pos_emb_table, out_head_w,
                        compute_dtype=jnp.bfloat16):
    # Same dtype path as the kernel (compute_dtype inputs, f32 accumulation).
    _, S = in_idx.shape
    x = (tok_emb_table[in_idx] + pos_emb_table[:S][None]).astype(compute_dtype)
    w = out_head_w.astype(compute_dtype)
    return jnp.einsum("bse,ve->bsv", x, w, preferred_element_type=jnp.float32)


if __name__ == "__main__":
    # Small config consistent with the module's __init__.
    # vocab_size deliberately NOT a multiple of 128 to exercise edge masking.
    cfg = dict(
        vocab_size=300,
        context_length=16,
        emb_dim=32,
        drop_rate=0.1,   # identity in eval mode
        num_layers=2,    # DummyTransformerBlock is identity
    )
    B, S = 2, 8

    key = jax.random.PRNGKey(0)
    k_tok, k_pos, k_out, k_idx = jax.random.split(key, 4)

    tok_emb_table = jax.random.normal(
        k_tok, (cfg["vocab_size"], cfg["emb_dim"]), dtype=jnp.float32
    )
    pos_emb_table = jax.random.normal(
        k_pos, (cfg["context_length"], cfg["emb_dim"]), dtype=jnp.float32
    )
    out_head_w = jax.random.normal(
        k_out, (cfg["vocab_size"], cfg["emb_dim"]), dtype=jnp.float32
    ) * (1.0 / (cfg["emb_dim"] ** 0.5))

    in_idx = jax.random.randint(k_idx, (B, S), 0, cfg["vocab_size"], dtype=jnp.int32)

    # --- default plan: bf16 compute, auto-sized tiles, x resident, W once ---
    w_prep = prepare_out_head_weight(out_head_w)        # hoisted one-time prep
    logits = dummy_gpt_forward(in_idx, tok_emb_table, pos_emb_table, w_prep)
    logits = jax.block_until_ready(logits)
    assert logits.shape == (B, S, cfg["vocab_size"])
    ref_bf16 = dummy_gpt_reference(in_idx, tok_emb_table, pos_emb_table, out_head_w)
    assert jnp.allclose(logits, ref_bf16, atol=2e-2, rtol=2e-2), (
        float(jnp.max(jnp.abs(logits - ref_bf16)))
    )

    # --- small-tile f32 plan: exercises multi-tile grid, the flipped grid
    #     ordering, and masked partial edge tiles (V=300 vs tv=128) ---------
    w_prep32 = prepare_out_head_weight(out_head_w, tv=128, compute_dtype=jnp.float32)
    logits32 = dummy_gpt_forward(
        in_idx, tok_emb_table, pos_emb_table, w_prep32,
        tv=128, tm=8, compute_dtype=jnp.float32,
    )
    logits32 = jax.block_until_ready(logits32)
    ref_f32 = dummy_gpt_reference(
        in_idx, tok_emb_table, pos_emb_table, out_head_w, jnp.float32
    )
    assert logits32.shape == (B, S, cfg["vocab_size"])
    assert jnp.allclose(logits32, ref_f32, atol=1e-4, rtol=1e-4), (
        float(jnp.max(jnp.abs(logits32 - ref_f32)))
    )

    print("KERNEL_OK")
</pallas_src>

<mosaic_0001>
module attributes {stable_mosaic.version = 11 : i64} {
  func.func @out_head_kernel(%arg0: i32, %arg1: i32, %arg2: memref<16x32xbf16, #tpu.memory_space<vmem>>, %arg3: memref<32x384xbf16, #tpu.memory_space<vmem>>, %arg4: memref<16x384xf32, #tpu.memory_space<vmem>>) attributes {dimension_semantics = [#tpu.dimension_semantics<parallel>, #tpu.dimension_semantics<parallel>], iteration_bounds = array<i64: 1, 1>, scalar_prefetch = 0 : i64, scratch_operands = 0 : i64, tpu.core_type = #tpu.core_type<tc>, window_params = [{transform_indices = @transform_0, window_bounds = array<i64: 16, 32>}, {transform_indices = @transform_1, window_bounds = array<i64: 32, 384>}, {transform_indices = @transform_2, window_bounds = array<i64: 16, 384>}]} {
    %c0 = arith.constant 0 : index
    %c0_0 = arith.constant 0 : index
    %0 = vector.load %arg2[%c0, %c0_0] : memref<16x32xbf16, #tpu.memory_space<vmem>>, vector<16x32xbf16>
    %c0_1 = arith.constant 0 : index
    %c0_2 = arith.constant 0 : index
    %1 = vector.load %arg3[%c0_1, %c0_2] : memref<32x384xbf16, #tpu.memory_space<vmem>>, vector<32x384xbf16>
    %cst = arith.constant dense<0.000000e+00> : vector<16x384xf32>
    %2 = tpu.matmul %0, %1, %cst {dimension_numbers = #tpu.dot_dimension_numbers<[1], [0], [0], [1], [0, 0, 1, 1], [], []>} : vector<16x32xbf16>, vector<32x384xbf16>, vector<16x384xf32> -> vector<16x384xf32>
    %c0_3 = arith.constant 0 : index
    %c0_4 = arith.constant 0 : index
    %3 = vector.load %arg4[%c0_3, %c0_4] : memref<16x384xf32, #tpu.memory_space<vmem>>, vector<16x384xf32>
    tpu.vector_store %arg4[%c0_3, %c0_4], %2 {strides = array<i32>} : memref<16x384xf32, #tpu.memory_space<vmem>>, vector<16x384xf32>,
    return
  }
  func.func @transform_0(%arg0: i32, %arg1: i32) -> (i32, i32) {
    %c0_i32 = arith.constant 0 : i32
    %c0_i32_0 = arith.constant 0 : i32
    return %arg0, %c0_i32 : i32, i32
  }
  func.func @transform_1(%arg0: i32, %arg1: i32) -> (i32, i32) {
    %c0_i32 = arith.constant 0 : i32
    %c0_i32_0 = arith.constant 0 : i32
    return %c0_i32, %arg1 : i32, i32
  }
  func.func @transform_2(%arg0: i32, %arg1: i32) -> (i32, i32) {
    %c0_i32 = arith.constant 0 : i32
    return %arg0, %arg1 : i32, i32
  }
}

</mosaic_0001>

<bundles_post_ra>
// kernel: tpu_custom_call.1
= control target key start
LH: loop header
LB: loop body
LE: loop exit
PB: predicated region body
PF: predicated region fallthrough
CT: control target
= control target key end

     0   :  { %7 = vsyncpa [#allocation3], 0  ;;  %s322_s0 = inlined_call_operand.hbm [shape: bf16[16,32], index: 0, kind: input, shape index: {}]   ;;  %s323_s1 = inlined_call_operand.hbm [shape: bf16[32,384], index: 1, kind: input, shape index: {}]   ;;  %s324_s2 = inlined_call_operand.hbm [shape: f32[16,300], index: 2, kind: output, shape index: {}]  }
   0x1   :  { %8 = vsyncpa [#allocation6], 0 }
   0x2   :  { %9 = vsyncpa [#allocation4], 0  ;;  %s14_s11 = sshll.u32 %s322_s0, 4  ;;  %s289_s12 = smov [#allocation2]   ;;  %s15_s11 = int_to_ptr.hbm [resolvable:$true] %s14_s11 }
   0x3   :  { %s16_s13 = sshll.u32 %s289_s12, 4  ;;  %s27_s16 = sshll.u32 %s323_s1, 4  ;;  %s17_s13 = int_to_ptr.vmem [resolvable:$true] %s16_s13  ;;  %s28_s16 = int_to_ptr.hbm [resolvable:$true] %s27_s16 }
   0x4   :  { %s290_s17 = smov 64   ;;  %s291_s18 = smov 4  }
   0x5   :  { %22 = dma.hbm_to_vmem [thread:$0]  %s15_s11, 128, %s17_s13, [#allocation3], %s290_s17, %s290_s17, %s291_s18  }
   0x6   :  { %s292_s19 = smov [#allocation5]   ;;  %s293_s21 = smov 192  }
   0x7   :  { %s29_s20 = sshll.u32 %s292_s19, 4  ;;  %s294_s22 = smov 12   ;;  %s30_s20 = int_to_ptr.vmem [resolvable:$true] %s29_s20 }
   0x8   :  { %35 = dma.hbm_to_vmem [thread:$0]  %s28_s16, 768, %s30_s20, [#allocation6], %s293_s21, %s293_s21, %s294_s22  }
   0x9   :  { %283 = dma.done.wait [#allocation3], 128  }
   0xa   :  { %284 = vsyncadd [#allocation3], 4294967168 }
   0xb   :  { %285 = dma.done.wait [#allocation6], 768  }
   0xc   :  { %286 = vsyncadd [#allocation6], 4294966528  ;;  %v182_v0 = vld [vmem:[#allocation5 + $0x18] sm:$0xf]  ;;  %v200_v1 = vld [vmem:[#allocation5 + $0x20] sm:$0xf0] }
   0xd   :  { %v199_v2 = vld [vmem:[#allocation5 + $0x1c] sm:$0xf]  ;;  %v183_v3 = vor.u32 %v200_v1, %v182_v0  ;;  %v184_v4 = vld [vmem:[#allocation5 + $0x24] sm:$0xf0]  ;;  %v190_v5 = vld [vmem:[#allocation5 + $0x20] sm:$0xf] }
   0xe   :  { %v201_v6 = vld [vmem:[#allocation5 + $0x28] sm:$0xf0]  ;;  %v187_v7 = vor.u32 %v199_v2, %v184_v4  ;;  %v170_v9 = vld [vmem:[#allocation5] sm:$0xf]  ;;  %v196_v11 = vld [vmem:[#allocation5 + $0x4] sm:$0xf] }
   0xf   :  { %v191_v8 = vor.u32 %v201_v6, %v190_v5  ;;  %v197_v10 = vld [vmem:[#allocation5 + $0x8] sm:$0xf0]  ;;  %102 = vmatpush.bf16.msra.mxu0 %v183_v3  ;;  %v172_v13 = vld [vmem:[#allocation5 + $0xc] sm:$0xf0]  ;;  %v178_v14 = vld [vmem:[#allocation5 + $0x8] sm:$0xf] }
  0x10   :  { %v171_v12 = vor.u32 %v197_v10, %v170_v9  ;;  %v198_v15 = vld [vmem:[#allocation5 + $0x10] sm:$0xf0]  ;;  %116 = vmatpush.bf16.msra.mxu1 %v187_v7  ;;  %v175_v16 = vor.u32 %v196_v11, %v172_v13  ;;  %v195_v18 = vld [vmem:[#allocation2] sm:$0xff]  ;;  %vm92_vm0 = vcmask 261120   ;;  %s295_s0 = smov [#allocation7]   ;;  %s150_s25 = sshll.u32 %s324_s2, 4  ;;  %s151_s25 = int_to_ptr.hbm [resolvable:$true] %s150_s25 }
  0x11   :  { %130 = vmatpush.bf16.msra.mxu2 %v191_v8  ;;  %v179_v17 = vor.u32 %v198_v15, %v178_v14  ;;  %s148_s1 = sshll.u32 %s295_s0, 4  ;;  %s296_s26 = smov 384   ;;  %s149_s1 = int_to_ptr.vmem [resolvable:$true] %s148_s1 }
  0x12   :  { %s297_s27 = smov 24  }
  0x13   :  { %103 = vmatpush.bf16.msra.mxu0 %v171_v12 }
  0x14   :  { %117 = vmatpush.bf16.msra.mxu1 %v175_v16 }
  0x15   :  { %131 = vmatpush.bf16.msra.mxu2 %v179_v17 }
  0x16   :  { %192 = vmatmul.msk.bf16.vlgmr.msra.gmra.mxu0 %vm92_vm0, %v195_v18 }
  0x17   :  { %193 = vmatmul.msk.bf16.vlgmr.msra.gmra.mxu1 %vm92_vm0, %v195_v18 }
  0x18   :  { %194 = vmatmul.msk.bf16.vlgmr.msra.gmra.mxu2 %vm92_vm0, %v195_v18 }
  0x93   :  { %v105_v19 = vpop.f32.mrf.mxu0 }
  0x94   :  { %138 = vst [vmem:[#allocation7] sm:$0xff] %v105_v19  ;;  %v119_v20 = vpop.f32.mrf.mxu1 }
  0x95   :  { %139 = vst [vmem:[#allocation7 + $0x8] sm:$0xff] %v119_v20 }
  0x9b   :  { %v133_v21 = vpop.f32.mrf.mxu2  ;;  %v107_v22 = vpop.f32.mrf.mxu0 }
  0x9c   :  { %140 = vst [vmem:[#allocation7 + $0x10] sm:$0xff] %v133_v21  ;;  %v121_v23 = vpop.f32.mrf.mxu1 }
  0x9d   :  { %141 = vst [vmem:[#allocation7 + $0x18] sm:$0xff] %v107_v22 }
  0x9e   :  { %142 = vst [vmem:[#allocation7 + $0x20] sm:$0xff] %v121_v23 }
  0xa3   :  { %v135_v24 = vpop.f32.mrf.mxu2 }
  0xa4   :  { %143 = vst [vmem:[#allocation7 + $0x28] sm:$0xff] %v135_v24 }
  0xa5   :  { %156 = dma.vmem_to_hbm [thread:$0]  %s149_s1, 768, %s151_s25, [#allocation4], %s296_s26, %s296_s26, %s297_s27  }
  0xa6   :  { %287 = dma.done.wait [#allocation4], 768  }
  0xa7   :  { %288 = vsyncadd [#allocation4], 4294966528 }
  0xa8   :  { %161 = vsyncpa [#allocation3], 1 }
  0xa9   :  { %162 = vsyncpa [#allocation6], 1 }
  0xaa   :  { %163 = vsyncpa [#allocation4], 1 }

</bundles_post_ra>
